<compile_context>
chip_gen: v6e
topology: v6e:2x2x1
jax: 0.10.0
libtpu: 0.0.40
codegen_flags: <defaults>
</compile_context>

<pallas_src>
import jax
import jax.numpy as jnp
from jax.experimental import pallas as pl
from jax.experimental.pallas import tpu as pltpu


# ----------------------------------- kernel -----------------------------------


def _qnet_kernel(xu_ref, w1_ref, b12_ref, w2_ref, w3_ref, b3_ref, q_ref):
    """Fused twin-Q MLP on one batch tile.

    xu_ref : (TB, Din)  bf16      concatenated [state_with_fake | action]
    w1_ref : (Din, HP)  bf16      [W1 | W4], zero-padded columns to HP
    b12_ref: (2,  HP)   f32       row 0 = fused b1, row 1 = fused b2
    w2_ref : (HP, HP)   bf16      block-diag(W2, W5)
    w3_ref : (HP, OP)   bf16      col 0 = W3, col 1 = W6, rest zero
    b3_ref : (1,  OP)   f32
    q_ref  : (TB, OP)   f32       col 0 = q1, col 1 = q2
    """
    # Layer 1 (both heads fused): bf16 operands, f32 accumulation.
    h = jnp.dot(xu_ref[...], w1_ref[...], preferred_element_type=jnp.float32)
    h = jnp.maximum(h + b12_ref[0:1, :], 0.0)                 # ReLU in f32
    # Layer 2: block-diag(W2, W5) keeps the two heads independent.
    h = jnp.dot(h.astype(jnp.bfloat16), w2_ref[...], preferred_element_type=jnp.float32)
    h = jnp.maximum(h + b12_ref[1:2, :], 0.0)                 # ReLU in f32
    # Layer 3: column 0 = q1, column 1 = q2, columns 2..7 are zero padding.
    q_ref[...] = (jnp.dot(h.astype(jnp.bfloat16), w3_ref[...],
                          preferred_element_type=jnp.float32)
                  + b3_ref[...])


def _round_up(x, m):
    return (x + m - 1) // m * m


def qnetwork_forward(state_f, action, packed, *, batch_tile=512):
    """state_f: [B, dim_state_with_fake], action: [B, num_actions].  Returns (q1, q2)."""
    w1, b12, w2, w3, b3 = packed
    B = state_f.shape[0]
    HP = w2.shape[0]          # fused/padded hidden width (128)
    OP = w3.shape[1]          # padded output width (8)

    # Fuse the concat once in the wrapper and cast matmul input to bf16.
    xu = jnp.concatenate([state_f, action], axis=1).astype(jnp.bfloat16)
    Din = xu.shape[1]

    # Batch tile: aim for >= 4 grid steps (v7x megacore / pipelining) but never go
    # below 256 rows on big batches (per-step overhead on single-TC v5e/v6e).
    tb_quarter = _round_up(-(-B // 4), 8)                     # ceil(B/4) rounded to sublanes
    TB = min(batch_tile, _round_up(B, 8), max(256, tb_quarter))
    Bp = _round_up(B, TB)
    if Bp != B:
        xu = jnp.pad(xu, ((0, Bp - B), (0, 0)))               # padded rows sliced off below

    def const(shape):
        return pl.BlockSpec(shape, lambda i: (0, 0))          # weights resident across grid

    q = pl.pallas_call(
        _qnet_kernel,
        out_shape=jax.ShapeDtypeStruct((Bp, OP), jnp.float32),
        grid=(Bp // TB,),
        in_specs=[pl.BlockSpec((TB, Din), lambda i: (i, 0)),
                  const(w1.shape), const(b12.shape),
                  const(w2.shape), const(w3.shape), const(b3.shape)],
        out_specs=pl.BlockSpec((TB, OP), lambda i: (i, 0)),
        compiler_params=pltpu.CompilerParams(
            dimension_semantics=("parallel",)),               # megacore sharding on v7x
    )(xu, w1, b12, w2, w3, b3)

    return q[:B, 0:1], q[:B, 1:2]


# ---------------- parameter init (deterministic, xavier_uniform / zero bias) ---------------


def xavier_uniform(key, fan_in, fan_out):
    bound = jnp.sqrt(6.0 / (fan_in + fan_out))
    # Stored as (in, out) so the kernel does x @ W (PyTorch keeps (out, in)).
    return jax.random.uniform(key, (fan_in, fan_out), jnp.float32, -bound, bound)


def init_qnetwork_params(key, in_dim, hidden_dim):
    keys = jax.random.split(key, 6)
    dims = [(in_dim, hidden_dim), (hidden_dim, hidden_dim), (hidden_dim, 1),
            (in_dim, hidden_dim), (hidden_dim, hidden_dim), (hidden_dim, 1)]
    params = []
    for k, (fi, fo) in zip(keys, dims):
        params.append(xavier_uniform(k, fi, fo))
        params.append(jnp.zeros((1, fo), jnp.float32))        # bias, kept 2-D
    return tuple(params)


def pack_qnetwork_params(params, in_dim, hidden_dim, fused_hidden=128, out_width=8):
    """Fuse the two Q-heads, zero-pad, and cast matmul operands to bf16 (one-time)."""
    (w1, b1, w2, b2, w3, b3, w4, b4, w5, b5, w6, b6) = params
    H, HP, OP = hidden_dim, fused_hidden, out_width
    assert 2 * H <= HP, f"fused_hidden ({HP}) must be >= 2 * hidden_dim ({2 * H})"
    assert OP >= 2 and OP % 2 == 0

    # Layer 1: [W1 | W4] -> [in_dim, 2H], zero-padded columns to HP.
    w1f = jnp.zeros((in_dim, HP), jnp.float32).at[:, :H].set(w1).at[:, H:2 * H].set(w4)
    b1f = (jnp.zeros((HP,), jnp.float32)
           .at[:H].set(b1.reshape(-1)).at[H:2 * H].set(b4.reshape(-1)))

    # Layer 2: block-diag(W2, W5), zero-padded to [HP, HP].
    w2f = (jnp.zeros((HP, HP), jnp.float32)
           .at[:H, :H].set(w2).at[H:2 * H, H:2 * H].set(w5))
    b2f = (jnp.zeros((HP,), jnp.float32)
           .at[:H].set(b2.reshape(-1)).at[H:2 * H].set(b5.reshape(-1)))

    # Layer 3: column 0 = q1 (W3 on head-1 rows), column 1 = q2 (W6 on head-2 rows).
    w3f = jnp.zeros((HP, OP), jnp.float32).at[:H, 0:1].set(w3).at[H:2 * H, 1:2].set(w6)
    b3f = jnp.zeros((1, OP), jnp.float32).at[:, 0:1].set(b3).at[:, 1:2].set(b6)

    b12 = jnp.stack([b1f, b2f], axis=0)                       # (2, HP) f32

    return (w1f.astype(jnp.bfloat16), b12,
            w2f.astype(jnp.bfloat16), w3f.astype(jnp.bfloat16), b3f)


# ---------------- glue: fake features / permutation (plain JAX) ---------------


def add_fake_features(state, num_fake, fake_noise_std, key):
    # TODO(synk): args.load_noise_distribution -> custom noise generator not representable
    # in-script; gaussian noise with std=fake_noise_std is used (the default behaviour).
    if num_fake == 0:
        return state
    noise = fake_noise_std * jax.random.normal(key, (state.shape[0], num_fake), jnp.float32)
    return jnp.concatenate([state, noise], axis=1)


def permute_features(state, permutation):
    # permutation is None in __init__ (set later via set_new_permutation) => identity.
    if permutation is None:
        return state
    return state[:, permutation]


if __name__ == "__main__":
    # Small shapes consistent with the module.
    batch = 8
    state_dim = 16
    num_fake = 4                       # dim_state_with_fake - state_dim
    dim_state_with_fake = state_dim + num_fake
    num_actions = 4
    hidden_dim = 32
    fake_noise_std = 0.1

    root = jax.random.PRNGKey(0)
    k_state, k_action, k_noise, k_params = jax.random.split(root, 4)

    state = jax.random.normal(k_state, (batch, state_dim), jnp.float32)
    action = jax.random.normal(k_action, (batch, num_actions), jnp.float32)

    # forward-pass glue (matches torch: add fake features -> permute)
    state_f = add_fake_features(state, num_fake, fake_noise_std, k_noise)
    state_f = permute_features(state_f, None)

    in_dim = dim_state_with_fake + num_actions
    params = init_qnetwork_params(k_params, in_dim, hidden_dim)
    packed = pack_qnetwork_params(params, in_dim, hidden_dim)

    q1, q2 = qnetwork_forward(state_f, action, packed)
    jax.block_until_ready((q1, q2))

    # --- reference checks ---
    xu = jnp.concatenate([state_f, action], axis=1)

    def ref_head_f32(x, wa, ba, wb, bb, wc, bc):
        h = jnp.maximum(x @ wa + ba, 0.0)
        h = jnp.maximum(h @ wb + bb, 0.0)
        return h @ wc + bc

    def ref_head_bf16(x, wa, ba, wb, bb, wc, bc):
        h = jnp.dot(x.astype(jnp.bfloat16), wa.astype(jnp.bfloat16),
                    preferred_element_type=jnp.float32) + ba
        h = jnp.maximum(h, 0.0)
        h = jnp.dot(h.astype(jnp.bfloat16), wb.astype(jnp.bfloat16),
                    preferred_element_type=jnp.float32) + bb
        h = jnp.maximum(h, 0.0)
        return jnp.dot(h.astype(jnp.bfloat16), wc.astype(jnp.bfloat16),
                       preferred_element_type=jnp.float32) + bc

    r1_bf = ref_head_bf16(xu, *params[0:6])
    r2_bf = ref_head_bf16(xu, *params[6:12])
    r1_f32 = ref_head_f32(xu, *params[0:6])
    r2_f32 = ref_head_f32(xu, *params[6:12])

    assert q1.shape == (batch, 1) and q2.shape == (batch, 1)
    # Tight check against a bf16-consistent JAX reference (same rounding path).
    assert jnp.allclose(q1, r1_bf, atol=5e-3, rtol=5e-3)
    assert jnp.allclose(q2, r2_bf, atol=5e-3, rtol=5e-3)
    # Looser sanity check against the pure-f32 reference (bf16 operand rounding).
    assert jnp.allclose(q1, r1_f32, atol=5e-2, rtol=5e-2)
    assert jnp.allclose(q2, r2_f32, atol=5e-2, rtol=5e-2)

    print("KERNEL_OK")
</pallas_src>

<mosaic_0001>
module attributes {stable_mosaic.version = 11 : i64} {
  func.func @_qnet_kernel(%arg0: i32, %arg1: memref<8x24xbf16, #tpu.memory_space<vmem>>, %arg2: memref<24x128xbf16, #tpu.memory_space<vmem>>, %arg3: memref<2x128xf32, #tpu.memory_space<vmem>>, %arg4: memref<128x128xbf16, #tpu.memory_space<vmem>>, %arg5: memref<128x8xbf16, #tpu.memory_space<vmem>>, %arg6: memref<1x8xf32, #tpu.memory_space<vmem>>, %arg7: memref<8x8xf32, #tpu.memory_space<vmem>>) attributes {dimension_semantics = [#tpu.dimension_semantics<parallel>], iteration_bounds = array<i64: 1>, scalar_prefetch = 0 : i64, scratch_operands = 0 : i64, tpu.core_type = #tpu.core_type<tc>, window_params = [{transform_indices = @transform_0, window_bounds = array<i64: 8, 24>}, {pipeline_mode = #tpu.pipeline_mode<synchronous>, transform_indices = @transform_1, window_bounds = array<i64: 24, 128>}, {pipeline_mode = #tpu.pipeline_mode<synchronous>, transform_indices = @transform_2, window_bounds = array<i64: 2, 128>}, {pipeline_mode = #tpu.pipeline_mode<synchronous>, transform_indices = @transform_3, window_bounds = array<i64: 128, 128>}, {pipeline_mode = #tpu.pipeline_mode<synchronous>, transform_indices = @transform_4, window_bounds = array<i64: 128, 8>}, {pipeline_mode = #tpu.pipeline_mode<synchronous>, transform_indices = @transform_5, window_bounds = array<i64: 1, 8>}, {transform_indices = @transform_6, window_bounds = array<i64: 8, 8>}]} {
    %c0 = arith.constant 0 : index
    %c0_0 = arith.constant 0 : index
    %0 = vector.load %arg1[%c0, %c0_0] : memref<8x24xbf16, #tpu.memory_space<vmem>>, vector<8x24xbf16>
    %c0_1 = arith.constant 0 : index
    %c0_2 = arith.constant 0 : index
    %1 = vector.load %arg2[%c0_1, %c0_2] : memref<24x128xbf16, #tpu.memory_space<vmem>>, vector<24x128xbf16>
    %cst = arith.constant dense<0.000000e+00> : vector<8x128xf32>
    %2 = tpu.matmul %0, %1, %cst {dimension_numbers = #tpu.dot_dimension_numbers<[1], [0], [0], [1], [0, 0, 1, 1], [], []>} : vector<8x24xbf16>, vector<24x128xbf16>, vector<8x128xf32> -> vector<8x128xf32>
    %c0_3 = arith.constant 0 : index
    %c0_4 = arith.constant 0 : index
    %3 = vector.load %arg3[%c0_3, %c0_4] : memref<2x128xf32, #tpu.memory_space<vmem>>, vector<1x128xf32>
    %4 = vector.broadcast %3 : vector<1x128xf32> to vector<8x128xf32>
    %5 = arith.addf %2, %4 : vector<8x128xf32>
    %cst_5 = arith.constant 0.000000e+00 : f32
    %6 = vector.broadcast %cst_5 : f32 to vector<8x128xf32>
    %7 = arith.maximumf %5, %6 : vector<8x128xf32>
    %8 = arith.truncf %7 : vector<8x128xf32> to vector<8x128xbf16>
    %c0_6 = arith.constant 0 : index
    %c0_7 = arith.constant 0 : index
    %9 = vector.load %arg4[%c0_6, %c0_7] : memref<128x128xbf16, #tpu.memory_space<vmem>>, vector<128x128xbf16>
    %cst_8 = arith.constant dense<0.000000e+00> : vector<8x128xf32>
    %10 = tpu.matmul %8, %9, %cst_8 {dimension_numbers = #tpu.dot_dimension_numbers<[1], [0], [0], [1], [0, 0, 1, 1], [], []>} : vector<8x128xbf16>, vector<128x128xbf16>, vector<8x128xf32> -> vector<8x128xf32>
    %c1 = arith.constant 1 : index
    %c0_9 = arith.constant 0 : index
    %11 = vector.load %arg3[%c1, %c0_9] : memref<2x128xf32, #tpu.memory_space<vmem>>, vector<1x128xf32>
    %12 = vector.broadcast %11 : vector<1x128xf32> to vector<8x128xf32>
    %13 = arith.addf %10, %12 : vector<8x128xf32>
    %cst_10 = arith.constant 0.000000e+00 : f32
    %14 = vector.broadcast %cst_10 : f32 to vector<8x128xf32>
    %15 = arith.maximumf %13, %14 : vector<8x128xf32>
    %16 = arith.truncf %15 : vector<8x128xf32> to vector<8x128xbf16>
    %c0_11 = arith.constant 0 : index
    %c0_12 = arith.constant 0 : index
    %17 = vector.load %arg5[%c0_11, %c0_12] : memref<128x8xbf16, #tpu.memory_space<vmem>>, vector<128x8xbf16>
    %cst_13 = arith.constant dense<0.000000e+00> : vector<8x8xf32>
    %18 = tpu.matmul %16, %17, %cst_13 {dimension_numbers = #tpu.dot_dimension_numbers<[1], [0], [0], [1], [0, 0, 1, 1], [], []>} : vector<8x128xbf16>, vector<128x8xbf16>, vector<8x8xf32> -> vector<8x8xf32>
    %c0_14 = arith.constant 0 : index
    %c0_15 = arith.constant 0 : index
    %19 = vector.load %arg6[%c0_14, %c0_15] : memref<1x8xf32, #tpu.memory_space<vmem>>, vector<1x8xf32>
    %20 = vector.broadcast %19 : vector<1x8xf32> to vector<8x8xf32>
    %21 = arith.addf %18, %20 : vector<8x8xf32>
    %c0_16 = arith.constant 0 : index
    %c0_17 = arith.constant 0 : index
    %22 = vector.load %arg7[%c0_16, %c0_17] : memref<8x8xf32, #tpu.memory_space<vmem>>, vector<8x8xf32>
    tpu.vector_store %arg7[%c0_16, %c0_17], %21 {strides = array<i32>} : memref<8x8xf32, #tpu.memory_space<vmem>>, vector<8x8xf32>,
    return
  }
  func.func @transform_0(%arg0: i32) -> (i32, i32) {
    %c0_i32 = arith.constant 0 : i32
    %c0_i32_0 = arith.constant 0 : i32
    return %arg0, %c0_i32 : i32, i32
  }
  func.func @transform_1(%arg0: i32) -> (i32, i32) {
    %c0_i32 = arith.constant 0 : i32
    %c0_i32_0 = arith.constant 0 : i32
    %c0_i32_1 = arith.constant 0 : i32
    return %c0_i32, %c0_i32_0 : i32, i32
  }
  func.func @transform_2(%arg0: i32) -> (i32, i32) {
    %c0_i32 = arith.constant 0 : i32
    %c0_i32_0 = arith.constant 0 : i32
    %c0_i32_1 = arith.constant 0 : i32
    return %c0_i32, %c0_i32_0 : i32, i32
  }
  func.func @transform_3(%arg0: i32) -> (i32, i32) {
    %c0_i32 = arith.constant 0 : i32
    %c0_i32_0 = arith.constant 0 : i32
    %c0_i32_1 = arith.constant 0 : i32
    return %c0_i32, %c0_i32_0 : i32, i32
  }
  func.func @transform_4(%arg0: i32) -> (i32, i32) {
    %c0_i32 = arith.constant 0 : i32
    %c0_i32_0 = arith.constant 0 : i32
    %c0_i32_1 = arith.constant 0 : i32
    return %c0_i32, %c0_i32_0 : i32, i32
  }
  func.func @transform_5(%arg0: i32) -> (i32, i32) {
    %c0_i32 = arith.constant 0 : i32
    %c0_i32_0 = arith.constant 0 : i32
    %c0_i32_1 = arith.constant 0 : i32
    return %c0_i32, %c0_i32_0 : i32, i32
  }
  func.func @transform_6(%arg0: i32) -> (i32, i32) {
    %c0_i32 = arith.constant 0 : i32
    %c0_i32_0 = arith.constant 0 : i32
    return %arg0, %c0_i32 : i32, i32
  }
}

</mosaic_0001>

<bundles_post_ra>
// kernel: tpu_custom_call.1
= control target key start
LH: loop header
LB: loop body
LE: loop exit
PB: predicated region body
PF: predicated region fallthrough
CT: control target
= control target key end

     0   :  { %11 = vsyncpa [#allocation3], 0  ;;  %s636_s0 = inlined_call_operand.vmem [shape: bf16[8,24], index: 0, kind: input, shape index: {}]   ;;  %s637_s1 = inlined_call_operand.hbm [shape: bf16[24,128], index: 1, kind: input, shape index: {}]   ;;  %s638_s2 = inlined_call_operand.vmem [shape: f32[2,128], index: 2, kind: input, shape index: {}]   ;;  %s639_s3 = inlined_call_operand.vmem [shape: bf16[128,128], index: 3, kind: input, shape index: {}]   ;;  %s640_s4 = inlined_call_operand.vmem [shape: bf16[128,8], index: 4, kind: input, shape index: {}]   ;;  %s641_s5 = inlined_call_operand.vmem [shape: f32[1,8], index: 5, kind: input, shape index: {}]   ;;  %s642_s6 = inlined_call_operand.hbm [shape: f32[8,8], index: 6, kind: output, shape index: {}]  }
   0x1   :  { %12 = vsyncpa [#allocation4], 0  ;;  %s505_s21 = smov [#allocation2]  }
   0x2   :  { %s20_s22 = sshll.u32 %s505_s21, 4  ;;  %s21_s22 = int_to_ptr.vmem [resolvable:$true] %s20_s22 }
   0x3   :  { %s469_s23 = scalar_lea.vmem %s21_s22, 192  ;;  %p474_p1 = scmp.lt.s32.totalorder %s21_s22, %s21_s22 }
   0x4   :  { %p470_p0 = scmp.ne.s32.totalorder %s21_s22, %s469_s23  ;;  %p475_p2 = scmp.lt.s32.totalorder %s469_s23, %s469_s23 }
   0x6   :  { %p476_p3 = por %p475_p2, %p474_p1 }
   0x8   :  { %p477_p4 = pnand %p476_p3, %p470_p0 }
   0xa   :  { %480 = shalt.err (!%p477_p4)
}
   0xb   :  { %s506_s24 = smov 64   ;;  %s507_s25 = smov 4  }
   0xc   :  { %26 = dma.hbm_to_vmem [thread:$0]  %s637_s1, 192, %s21_s22, [#allocation3], %s506_s24, %s506_s24, %s507_s25  }
   0xd   :  { %501 = dma.done.wait [#allocation3], 192  }
   0xe   :  { %502 = vsyncadd [#allocation3], 4294967104  ;;  %v508_v0 = vmov 0.0   ;;  %vm509_vm0 = vmmov 0   ;;  %vm61_vm1 = vcmask 1043456   ;;  %v445_v3 = vld [vmem:[%s639_s3 + $0x38] sm:$0xff]  }
   0xf   :  { %389 = vmatprep.subr.bf16.mxu0 %v508_v0  ;;  %393 = vmatprep.mubr.msk.bf16.mxu0 %vm509_vm0, %v508_v0  ;;  %v443_v1 = vld [vmem:[#allocation2 + $0x8] ss:$0 sps:$4 sm:$0xff]   ;;  %v444_v4 = vld [vmem:[#allocation2] sm:$0xff]   ;;  %v446_v5 = vld [vmem:[%s639_s3 + $0x30] sm:$0xff]   ;;  %vm57_vm2 = vcmask 195584   ;;  %s510_s15 = smov [#allocation5]  }
  0x10   :  { %397 = vmatprep.subr.bf16.mxu1 %v508_v0  ;;  %413 = vmatprep.mubr.msk.bf16.mxu1 %vm509_vm0, %v508_v0  ;;  %v63_v2 = vsel %vm61_vm1, %v443_v1, 0  ;;  %v39_v6 = vld [vmem:[%s636_s0] sm:$0xf]  ;;  %v447_v7 = vld [vmem:[%s639_s3 + $0x28] sm:$0xff]   ;;  %v449_v9 = vld [vmem:[%s639_s3 + $0x18] sm:$0xff]   ;;  %s337_s16 = sshll.u32 %s510_s15, 4  ;;  %s338_s16 = int_to_ptr.vmem [resolvable:$true] %s337_s16 }
  0x11   :  { %390 = vmatpush3.bf16.msra.mxu0 %v63_v2  ;;  %398 = vmatpush3.bf16.msra.mxu1 %v445_v3  ;;  %v448_v8 = vld [vmem:[%s639_s3 + $0x20] sm:$0xff]   ;;  %v450_v10 = vld [vmem:[%s639_s3 + $0x10] sm:$0xff]   ;;  %v451_v11 = vld [vmem:[%s639_s3 + $0x8] sm:$0xff]   ;;  %vm329_vm3 = vcmask 64512   ;;  %p486_p6 = scmp.lt.s32.totalorder %s338_s16, %s338_s16 }
  0x12   :  { %391 = vmatprep.subr.bf16.mxu0 %v508_v0  ;;  %399 = vmatprep.subr.bf16.mxu1 %v508_v0  ;;  %v452_v12 = vld [vmem:[%s639_s3] sm:$0xff]   ;;  %v453_v13 = vld [vmem:[%s640_s4 + $0x38] sm:$0xff]   ;;  %v454_v14 = vld [vmem:[%s640_s4 + $0x30] sm:$0xff]  }
  0x13   :  { %v455_v15 = vld [vmem:[%s640_s4 + $0x28] sm:$0xff]   ;;  %v456_v16 = vld [vmem:[%s640_s4 + $0x20] sm:$0xff]   ;;  %v457_v17 = vld [vmem:[%s640_s4 + $0x18] sm:$0xff]  }
  0x14   :  { %v458_v18 = vld [vmem:[%s640_s4 + $0x10] sm:$0xff]   ;;  %v346_v19 = vld [vmem:[%s638_s2] ss:$0 sm:$0xff]  ;;  %v459_v27 = vld [vmem:[%s640_s4 + $0x8] sm:$0xff]  }
  0x15   :  { %392 = vmatpush3.bf16.msra.mxu0 %v444_v4  ;;  %400 = vmatpush3.bf16.msra.mxu1 %v446_v5  ;;  %v460_v28 = vld [vmem:[%s640_s4] sm:$0xff]  }
  0x16   :  { %417 = vmatprep.subr.bf16.mxu0 %v508_v0  ;;  %401 = vmatprep.subr.bf16.mxu1 %v508_v0  ;;  %v350_v29 = vld [vmem:[%s638_s2 + $0x1] ss:$0 sm:$0xff]  ;;  %v359_v37 = vld [vmem:[%s641_s5] ss:$0 sm:$0xff]  ;;  %s481_s2 = scalar_lea.vmem %s338_s16, 128 }
  0x17   :  { %p482_p5 = scmp.ne.s32.totalorder %s338_s16, %s481_s2  ;;  %p487_p7 = scmp.lt.s32.totalorder %s481_s2, %s481_s2 }
  0x18   :  { %394 = vmatmul.mubr.msk.bf16.vlgmr.msra.gmra.mxu0 %vm57_vm2, %v39_v6 }
  0x19   :  { %433 = vmatprep.mubr.msk.bf16.mxu0 %vm509_vm0, %v508_v0  ;;  %402 = vmatpush3.bf16.msra.mxu1 %v447_v7  ;;  %p488_p8 = por %p487_p7, %p486_p6 }
  0x1a   :  { %403 = vmatprep.subr.bf16.mxu1 %v508_v0  ;;  %418 = vmatpush3.bf16.msra.mxu0 %v453_v13 }
  0x1b   :  { %419 = vmatprep.subr.bf16.mxu0 %v508_v0  ;;  %p489_p9 = pnand %p488_p8, %p482_p5 }
  0x1d   :  { %404 = vmatpush3.bf16.msra.mxu1 %v448_v8 }
  0x1e   :  { %405 = vmatprep.subr.bf16.mxu1 %v508_v0  ;;  %420 = vmatpush3.bf16.msra.mxu0 %v454_v14 }
  0x1f   :  { %421 = vmatprep.subr.bf16.mxu0 %v508_v0 }
  0x21   :  { %406 = vmatpush3.bf16.msra.mxu1 %v449_v9 }
  0x22   :  { %407 = vmatprep.subr.bf16.mxu1 %v508_v0  ;;  %422 = vmatpush3.bf16.msra.mxu0 %v455_v15 }
  0x23   :  { %423 = vmatprep.subr.bf16.mxu0 %v508_v0 }
  0x25   :  { %408 = vmatpush3.bf16.msra.mxu1 %v450_v10 }
  0x26   :  { %409 = vmatprep.subr.bf16.mxu1 %v508_v0  ;;  %424 = vmatpush3.bf16.msra.mxu0 %v456_v16 }
  0x27   :  { %425 = vmatprep.subr.bf16.mxu0 %v508_v0 }
  0x29   :  { %410 = vmatpush3.bf16.msra.mxu1 %v451_v11 }
  0x2a   :  { %411 = vmatprep.subr.bf16.mxu1 %v508_v0  ;;  %426 = vmatpush3.bf16.msra.mxu0 %v457_v17 }
  0x2b   :  { %427 = vmatprep.subr.bf16.mxu0 %v508_v0 }
  0x2d   :  { %412 = vmatpush3.bf16.msra.mxu1 %v452_v12 }
  0x2e   :  { %428 = vmatpush3.bf16.msra.mxu0 %v458_v18 }
  0x2f   :  { %429 = vmatprep.subr.bf16.mxu0 %v508_v0 }
  0x32   :  { %430 = vmatpush3.bf16.msra.mxu0 %v459_v27 }
  0x33   :  { %431 = vmatprep.subr.bf16.mxu0 %v508_v0 }
  0x36   :  { %432 = vmatpush3.bf16.msra.mxu0 %v460_v28 }
  0xd8   :  { %v99_v20 = vpop.f32.mrf.mxu0 }
  0xd9   :  { %v100_v21 = vadd.f32 %v346_v19, %v99_v20 }
  0xda   :  { %v395_v22 = vpop.f32.mrf.mxu0 }
  0xdb   :  { %v105_v23 = vmax.f32 %v100_v21, 0.0 }
  0xdc   :  { %v102_v24 = vpop.f32.mrf.mxu0 }
  0xdd   :  { %v106_v25 = vpack.c.bf16 %v105_v23, %v105_v23 }
  0xde   :  { %v396_v26 = vpop.f32.mrf.mxu0 }
  0xdf   :  { %414 = vmatmul.mubr.bf16.vlgmr.msra.gmra.mxu1 %v106_v25 }
 0x19f   :  { %v210_v30 = vpop.f32.mrf.mxu1 }
 0x1a0   :  { %v211_v31 = vadd.f32 %v350_v29, %v210_v30 }
 0x1a1   :  { %v415_v32 = vpop.f32.mrf.mxu1 }
 0x1a2   :  { %v216_v33 = vmax.f32 %v211_v31, 0.0 }
 0x1a3   :  { %v213_v34 = vpop.f32.mrf.mxu1 }
 0x1a4   :  { %v217_v35 = vpack.c.bf16 %v216_v33, %v216_v33 }
 0x1a5   :  { %v416_v36 = vpop.f32.mrf.mxu1 }
 0x1a6   :  { %434 = vmatmul.mubr.bf16.vlgmr.msra.gmra.mxu0 %v217_v35 }
 0x266   :  { %v323_v38 = vpop.f32.mrf.mxu0 }
 0x267   :  { %v324_v39 = vadd.f32 %v359_v37, %v323_v38 }
 0x268   :  { %v435_v40 = vpop.f32.mrf.mxu0 }
 0x269   :  { %330 = vst.msk [vmem:[#allocation5] sm:$0xff] %vm329_vm3, %v324_v39 }
 0x26a   :  { %v326_v41 = vpop.f32.mrf.mxu0 }
 0x26b   :  { %492 = shalt.err (!%p489_p9)
}
 0x26c   :  { %340 = dma.vmem_to_hbm [thread:$0]  %s338_s16, 128, %s642_s6, [#allocation4]   ;;  %v436_v42 = vpop.f32.mrf.mxu0 }
 0x26d   :  { %503 = dma.done.wait [#allocation4], 128  }
 0x26e   :  { %504 = vsyncadd [#allocation4], 4294967168 }
 0x26f   :  { %344 = vsyncpa [#allocation3], 1 }
 0x270   :  { %345 = vsyncpa [#allocation4], 1 }

</bundles_post_ra>
